<compile_context>
chip_gen: v7x
topology: tpu7x:2x2x1
jax: 0.10.0
libtpu: 0.0.40
codegen_flags: <defaults>
</compile_context>

<pallas_src>
import jax
import jax.numpy as jnp
from jax.experimental import pallas as pl
from jax.experimental.pallas import tpu as pltpu


def _qbbn_apply_kernel(x_ref, bmat_ref, bias_ref, out_ref):
    """Folded-BN application as a banded MXU matmul.

    x_ref:    (TC, H*W)  float32 -- rows of x.reshape(N*C, H*W), native layout
    bmat_ref: (H*W, W)   float32 -- B[h*W + w, w'] = wt[h] * delta(w, w')
    bias_ref: (TC, W)    float32 -- per-channel-row bias tile
    out_ref:  (TC, W)    float32
    """
    out_ref[...] = (
        jnp.dot(x_ref[...], bmat_ref[...], preferred_element_type=jnp.float32)
        + bias_ref[...]
    ).astype(out_ref.dtype)


def qbbn_forward(x, gamma, gamma_weight, beta, b, running_mean, running_var,
                 *, scale=1.0, zero_point=0.0, tau=0.9, avgr=0.9):
    n, c, h, w = x.shape
    assert c == h == w, "torch `wt @ x + bias` only composes when C == H == W"
    hw = h * w

    # ---- adapt(): depends only on x[0] + tiny params -> plain XLA ----------
    # TODO(synk): at scale this x[0] stats pass could be folded into a kernel
    # prologue (SMEM scratch) to save one HBM read of x[0]; low priority here.
    x0 = x[0].astype(jnp.float32)
    m = scale * (jnp.mean(x0, axis=(1, 2)) - zero_point)       # (C,)
    v = jnp.var(x0, axis=(1, 2)) * (scale * scale)             # biased var (unbiased=False)
    nm = avgr * running_mean + (1.0 - avgr) * m
    nv = avgr * running_var + (1.0 - avgr) * v
    md = nm - running_mean
    t = jnp.sum(md * md / (running_var + 1e-6))
    t = tau * (1.0 - jnp.exp(-t))
    mean = t * running_mean + (1.0 - t) * nm                   # (C,)
    var = t * running_var + (1.0 - t) * nv                     # (C,)

    # ---- forward() folded affine (parameter-only) ---------------------------
    vd = jax.lax.rsqrt(1e-5 + var)                             # (C,)
    wt = jnp.diagonal(gamma_weight) * vd                       # (C,), indexes H
    bias = beta + (b - mean) * gamma * vd                      # (C, W)

    # Banded contraction matrix B (H*W, W): folds the H-sum into one MXU matmul
    # on the native NCHW layout.  Size ~H*W*W*4 bytes (16 KiB at toy size).
    bmat = (wt[:, None, None]
            * jnp.eye(w, dtype=jnp.float32)[None, :, :]).reshape(hw, w)

    # Free contiguous reshape of NCHW -> (N*C, H*W); no relayout pass in HBM.
    x2 = x.reshape(n * c, hw).astype(jnp.float32)

    # Row tile along N*C: one image's channels per grid step; split further if
    # an x block would exceed ~4 MiB (keeps the same kernel inside v7x's
    # smaller scoped VMEM when shapes grow).  Tiles stay multiples of 8.
    tc = c
    while tc * hw * 4 > (4 << 20) and tc % 16 == 0:
        tc //= 2
    num_ctiles = c // tc

    out_flat = pl.pallas_call(
        _qbbn_apply_kernel,
        out_shape=jax.ShapeDtypeStruct((n * c, w), jnp.float32),
        grid_spec=pltpu.PrefetchScalarGridSpec(
            num_scalar_prefetch=0,
            grid=(n, num_ctiles),
            in_specs=[
                pl.BlockSpec((tc, hw), lambda ni, ci: (ni * num_ctiles + ci, 0)),
                pl.BlockSpec((hw, w), lambda ni, ci: (0, 0)),
                pl.BlockSpec((tc, w), lambda ni, ci: (ci, 0)),
            ],
            out_specs=pl.BlockSpec(
                (tc, w), lambda ni, ci: (ni * num_ctiles + ci, 0)),
        ),
        compiler_params=pltpu.CompilerParams(
            dimension_semantics=("parallel", "parallel"),
        ),
        cost_estimate=pl.CostEstimate(
            flops=2 * n * c * hw * w + n * c * w,
            transcendentals=0,
            bytes_accessed=4 * (n * c * hw + hw * w + c * w + n * c * w),
        ),
    )(x2, bmat, bias)
    return out_flat.reshape(n, c, w)


def qbbn_reference(x, gamma, gamma_weight, beta, b, rm, rv,
                   *, scale=1.0, zero_point=0.0, tau=0.9, avgr=0.9):
    x0 = x[0]
    m = scale * (jnp.mean(x0, axis=(1, 2)) - zero_point)
    v = jnp.var(x0, axis=(1, 2)) * scale ** 2
    nm = avgr * rm + (1.0 - avgr) * m
    nv = avgr * rv + (1.0 - avgr) * v
    md = nm - rm
    t = jnp.sum(md * md / (rv + 1e-6))
    t = tau * (1.0 - jnp.exp(-t))
    mean = t * rm + (1.0 - t) * nm
    var = t * rv + (1.0 - t) * nv
    vd = 1.0 / jnp.sqrt(1e-5 + var)
    wt = jnp.diagonal(gamma_weight * vd)                 # (C,)
    bias = beta + (b - mean) * gamma * vd                # (C, C)
    out1 = jnp.einsum('h,nchw->ncw', wt, x)              # (N, C, W)
    return out1 + bias


if __name__ == "__main__":
    N, C, H, W = 2, 16, 16, 16          # NCHW, C == H == W (see layout note)

    key = jax.random.PRNGKey(0)
    ks = jax.random.split(key, 7)
    gamma = 0.1 * jax.random.normal(ks[0], (C, C), jnp.float32)
    weight = 0.1 * jax.random.normal(ks[1], (C, C), jnp.float32)
    beta = jax.random.normal(ks[2], (C,), jnp.float32)
    bvec = jax.random.normal(ks[3], (C,), jnp.float32)
    running_mean = jax.random.normal(ks[4], (C,), jnp.float32)
    running_var = jax.random.uniform(ks[5], (C,), jnp.float32, 0.5, 1.5)
    x = jax.random.normal(ks[6], (N, C, H, W), jnp.float32)

    # __init__ precompute: self.gamma_weight = torch.mm(gamma, weight)
    gamma_weight = gamma @ weight

    out = qbbn_forward(x, gamma, gamma_weight, beta, bvec,
                       running_mean, running_var)
    out = jax.block_until_ready(out)

    ref = qbbn_reference(x, gamma, gamma_weight, beta, bvec,
                         running_mean, running_var)
    assert out.shape == (N, C, W)
    assert jnp.allclose(out, ref, rtol=1e-4, atol=1e-4), "mismatch vs reference"

    print("KERNEL_OK")
</pallas_src>

<mosaic_0001>
module attributes {stable_mosaic.version = 11 : i64} {
  func.func @_qbbn_apply_kernel(%arg0: i32, %arg1: i32, %arg2: memref<16x256xf32, #tpu.memory_space<vmem>>, %arg3: memref<256x16xf32, #tpu.memory_space<vmem>>, %arg4: memref<16x16xf32, #tpu.memory_space<vmem>>, %arg5: memref<16x16xf32, #tpu.memory_space<vmem>>) attributes {dimension_semantics = [#tpu.dimension_semantics<parallel>, #tpu.dimension_semantics<parallel>], iteration_bounds = array<i64: 2, 1>, scalar_prefetch = 0 : i64, scratch_operands = 0 : i64, tpu.core_type = #tpu.core_type<tc>, window_params = [{transform_indices = @transform_0, window_bounds = array<i64: 16, 256>}, {pipeline_mode = #tpu.pipeline_mode<synchronous>, transform_indices = @transform_1, window_bounds = array<i64: 256, 16>}, {transform_indices = @transform_2, window_bounds = array<i64: 16, 16>}, {transform_indices = @transform_3, window_bounds = array<i64: 16, 16>}]} {
    %c0 = arith.constant 0 : index
    %c0_0 = arith.constant 0 : index
    %0 = vector.load %arg2[%c0, %c0_0] : memref<16x256xf32, #tpu.memory_space<vmem>>, vector<16x256xf32>
    %c0_1 = arith.constant 0 : index
    %c0_2 = arith.constant 0 : index
    %1 = vector.load %arg3[%c0_1, %c0_2] : memref<256x16xf32, #tpu.memory_space<vmem>>, vector<256x16xf32>
    %cst = arith.constant dense<0.000000e+00> : vector<16x16xf32>
    %2 = tpu.matmul %0, %1, %cst {dimension_numbers = #tpu.dot_dimension_numbers<[1], [0], [0], [1], [0, 0, 1, 1], [], []>} : vector<16x256xf32>, vector<256x16xf32>, vector<16x16xf32> -> vector<16x16xf32>
    %c0_3 = arith.constant 0 : index
    %c0_4 = arith.constant 0 : index
    %3 = vector.load %arg4[%c0_3, %c0_4] : memref<16x16xf32, #tpu.memory_space<vmem>>, vector<16x16xf32>
    %4 = arith.addf %2, %3 : vector<16x16xf32>
    %c0_5 = arith.constant 0 : index
    %c0_6 = arith.constant 0 : index
    %5 = vector.load %arg5[%c0_5, %c0_6] : memref<16x16xf32, #tpu.memory_space<vmem>>, vector<16x16xf32>
    tpu.vector_store %arg5[%c0_5, %c0_6], %4 {strides = array<i32>} : memref<16x16xf32, #tpu.memory_space<vmem>>, vector<16x16xf32>,
    return
  }
  func.func @transform_0(%arg0: i32, %arg1: i32) -> (i32, i32) {
    %c1_i32 = arith.constant 1 : i32
    %0 = arith.muli %arg0, %c1_i32 : i32
    %1 = arith.addi %0, %arg1 : i32
    %c0_i32 = arith.constant 0 : i32
    %c0_i32_0 = arith.constant 0 : i32
    return %1, %c0_i32 : i32, i32
  }
  func.func @transform_1(%arg0: i32, %arg1: i32) -> (i32, i32) {
    %c0_i32 = arith.constant 0 : i32
    %c0_i32_0 = arith.constant 0 : i32
    %c0_i32_1 = arith.constant 0 : i32
    return %c0_i32, %c0_i32_0 : i32, i32
  }
  func.func @transform_2(%arg0: i32, %arg1: i32) -> (i32, i32) {
    %c0_i32 = arith.constant 0 : i32
    %c0_i32_0 = arith.constant 0 : i32
    return %arg1, %c0_i32 : i32, i32
  }
  func.func @transform_3(%arg0: i32, %arg1: i32) -> (i32, i32) {
    %c1_i32 = arith.constant 1 : i32
    %0 = arith.muli %arg0, %c1_i32 : i32
    %1 = arith.addi %0, %arg1 : i32
    %c0_i32 = arith.constant 0 : i32
    %c0_i32_0 = arith.constant 0 : i32
    return %1, %c0_i32 : i32, i32
  }
}

</mosaic_0001>

<bundles_post_ra>
// kernel: tpu_custom_call.1
= control target key start
LH: loop header
LB: loop body
LE: loop exit
PB: predicated region body
PF: predicated region fallthrough
CT: control target
= control target key end

     0   :  { %s590_s12 = smov 0   ;;  %s592_s13 = smov 0   ;;  %s735_s0 = inlined_call_operand.vmem [shape: f32[32,256], index: 0, kind: input, shape index: {}]   ;;  %s736_s1 = inlined_call_operand.vmem [shape: f32[256,16], index: 1, kind: input, shape index: {}]   ;;  %s737_s2 = inlined_call_operand.vmem [shape: f32[16,16], index: 2, kind: input, shape index: {}]   ;;  %s738_s3 = inlined_call_operand.vmem [shape: f32[32,16], index: 3, kind: output, shape index: {}]  }
   0x1   :  { %s594_s14 = smov 0  }
   0x2 LB: > { %s25_s15 = sadd.s32 1, %s564_s13  ;;  %p427_p0 = scmp.ge.s32.totalorder %s568_s14, 1  ;;  %s568_s14 = sphi %s594_s14, %s13_s14   ;;  %s564_s13 = sphi %s592_s13, %s740_s13   ;;  %s560_s12 = sphi %s590_s12, %s739_s12  }
   0x3   : > { %p27_p1 = scmp.ge.s32.totalorder %s25_s15, 2  ;;  %p168_p2 = scmp.lt.s32.totalorder %s568_s14, 3 }
   0x5   : > { %s742_s15 = smov (%p27_p1, %s25_s15), 0  ;;  %p169_p3 = pnand %p427_p0, %p168_p2 }
   0x6   : > { %v243_v0 = vld [vmem:[%s736_s1 + $0x80] sm:$0xff] (!%p169_p3)  ;;  %v244_v1 = vld [vmem:[%s736_s1 + $0x88] sm:$0xff] (!%p169_p3)  ;;  %s428_s22 = sshll.u32 (!%p169_p3), %s560_s12, 1  ;;  %v245_v5 = vld [vmem:[%s736_s1 + $0x90] sm:$0xff] (!%p169_p3)  ;;  %vm336_vm0 = vcmask (!%p169_p3), 130048  }
   0x7   : > { %172 = sbr.rel (%p169_p3) target bundleno = 260 (0x104), region = 32  ;;  %v227_v2 = vld [vmem:[%s736_s1] sm:$0xff] (!%p169_p3)  ;;  %v474_v3 = vpack.c.bf16 (!%p169_p3), %v244_v1, %v243_v0  ;;  %v228_v4 = vld [vmem:[%s736_s1 + $0x8] sm:$0xff] (!%p169_p3)  ;;  %v246_v6 = vld [vmem:[%s736_s1 + $0x98] sm:$0xff] (!%p169_p3)  ;;  %p202_p4 = scmp.lt.s32.totalorder (!%p169_p3), %s428_s22, 3 }
   0x8   : > { %v476_v7 = vpack.c.bf16 (!%p169_p3), %v228_v4, %v227_v2  ;;  %v478_v8 = vpack.c.bf16 (!%p169_p3), %v246_v6, %v245_v5  ;;  %v229_v9 = vld [vmem:[%s736_s1 + $0x10] sm:$0xff] (!%p169_p3)  ;;  %v230_v10 = vld [vmem:[%s736_s1 + $0x18] sm:$0xff] (!%p169_p3)  ;;  %v247_v11 = vld [vmem:[%s736_s1 + $0xa0] sm:$0xff] (!%p169_p3) }
   0x9   : > { %475 = vmatprep.subr.bf16.mxu0 (!%p169_p3), %v474_v3  ;;  %506 = vmatprep.subr.bf16.mxu1 (!%p169_p3), %v474_v3  ;;  %v248_v12 = vld [vmem:[%s736_s1 + $0xa8] sm:$0xff] (!%p169_p3)  ;;  %v480_v13 = vpack.c.bf16 (!%p169_p3), %v230_v10, %v229_v9  ;;  %v231_v15 = vld [vmem:[%s736_s1 + $0x20] sm:$0xff] (!%p169_p3)  ;;  %v249_v17 = vld [vmem:[%s736_s1 + $0xb0] sm:$0xff] (!%p169_p3) }
   0xa   : > { %477 = vmatpush3.bf16.msra.mxu0 (!%p169_p3), %v476_v7  ;;  %514 = vmatpush3.bf16.msra.mxu1 (!%p169_p3), %v476_v7  ;;  %v482_v14 = vpack.c.bf16 (!%p169_p3), %v248_v12, %v247_v11  ;;  %v232_v16 = vld [vmem:[%s736_s1 + $0x28] sm:$0xff] (!%p169_p3)  ;;  %v250_v18 = vld [vmem:[%s736_s1 + $0xb8] sm:$0xff] (!%p169_p3)  ;;  %v233_v21 = vld [vmem:[%s736_s1 + $0x30] sm:$0xff] (!%p169_p3) }
   0xb   : > { %479 = vmatprep.subr.bf16.mxu0 (!%p169_p3), %v478_v8  ;;  %507 = vmatprep.subr.bf16.mxu1 (!%p169_p3), %v478_v8  ;;  %v484_v19 = vpack.c.bf16 (!%p169_p3), %v232_v16, %v231_v15  ;;  %v486_v20 = vpack.c.bf16 (!%p169_p3), %v250_v18, %v249_v17  ;;  %v234_v22 = vld [vmem:[%s736_s1 + $0x38] sm:$0xff] (!%p169_p3)  ;;  %v251_v23 = vld [vmem:[%s736_s1 + $0xc0] sm:$0xff] (!%p169_p3)  ;;  %v252_v24 = vld [vmem:[%s736_s1 + $0xc8] sm:$0xff] (!%p169_p3) }
   0xc   : > { %v488_v27 = vpack.c.bf16 (!%p169_p3), %v234_v22, %v233_v21  ;;  %v490_v28 = vpack.c.bf16 (!%p169_p3), %v252_v24, %v251_v23  ;;  %v235_v29 = vld [vmem:[%s736_s1 + $0x40] sm:$0xff] (!%p169_p3)  ;;  %v236_v30 = vld [vmem:[%s736_s1 + $0x48] sm:$0xff] (!%p169_p3)  ;;  %v253_v31 = vld [vmem:[%s736_s1 + $0xd0] sm:$0xff] (!%p169_p3) }
   0xd   : > { %v254_v32 = vld [vmem:[%s736_s1 + $0xd8] sm:$0xff] (!%p169_p3)  ;;  %v492_v33 = vpack.c.bf16 (!%p169_p3), %v236_v30, %v235_v29  ;;  %v237_v35 = vld [vmem:[%s736_s1 + $0x50] sm:$0xff] (!%p169_p3)  ;;  %v255_v37 = vld [vmem:[%s736_s1 + $0xe0] sm:$0xff] (!%p169_p3) }
   0xe   : > { %s744_s22 = smov (!%p202_p4, %s428_s22), 3  ;;  %481 = vmatpush3.bf16.msra.mxu0 %v480_v13  ;;  %515 = vmatpush3.bf16.msra.mxu1 %v480_v13  ;;  %v494_v34 = vpack.c.bf16 %v254_v32, %v253_v31  ;;  %v238_v36 = vld [vmem:[%s736_s1 + $0x58] sm:$0xff]  ;;  %v256_v38 = vld [vmem:[%s736_s1 + $0xe8] sm:$0xff]  ;;  %v239_v41 = vld [vmem:[%s736_s1 + $0x60] sm:$0xff] }
   0xf   : > { %s435_s17 = sshll.u32 %s744_s22, 4  ;;  %483 = vmatprep.subr.bf16.mxu0 %v482_v14  ;;  %508 = vmatprep.subr.bf16.mxu1 %v482_v14  ;;  %v496_v39 = vpack.c.bf16 %v238_v36, %v237_v35  ;;  %v498_v40 = vpack.c.bf16 %v256_v38, %v255_v37  ;;  %v240_v42 = vld [vmem:[%s736_s1 + $0x68] sm:$0xff]  ;;  %v257_v43 = vld [vmem:[%s736_s1 + $0xf0] sm:$0xff]  ;;  %v258_v44 = vld [vmem:[%s736_s1 + $0xf8] sm:$0xff]  ;;  %s432_s16 = sshll.u32 %s744_s22, 3 }
  0x10   : > { %s656_s25 = scalar_lea.vmem %s735_s0, %s435_s17  ;;  %v500_v45 = vpack.c.bf16 %v240_v42, %v239_v41  ;;  %v502_v46 = vpack.c.bf16 %v258_v44, %v257_v43  ;;  %v241_v47 = vld [vmem:[%s736_s1 + $0x70] sm:$0xff]  ;;  %v242_v48 = vld [vmem:[%s736_s1 + $0x78] sm:$0xff]  ;;  %v259_v54 = vld [vmem:[%s737_s2] sm:$0xff] }
  0x11   : > { %v224_v25 = vld [vmem:[%s656_s25 + $0x8] sm:$0xff]  ;;  %v226_v26 = vld [vmem:[%s656_s25 + $0x18] sm:$0xff]  ;;  %v504_v49 = vpack.c.bf16 %v242_v48, %v241_v47  ;;  %v223_v50 = vld [vmem:[%s656_s25] sm:$0xff] }
  0x12   : > { %325 = vmatprep.mubr.f32.mxu0 %v224_v25  ;;  %485 = vmatpush3.bf16.msra.mxu0 %v484_v19  ;;  %v225_v51 = vld [vmem:[%s656_s25 + $0x10] sm:$0xff]  ;;  %v260_v56 = vld [vmem:[%s737_s2 + $0x8] sm:$0xff]  ;;  %s220_s25 = scalar_lea.vmem %s738_s3, %s432_s16 }
  0x13   : > { %516 = vmatpush3.bf16.msra.mxu1 %v484_v19  ;;  %487 = vmatprep.subr.bf16.mxu0 %v486_v20 }
  0x14   : > { %509 = vmatprep.subr.bf16.mxu1 %v486_v20  ;;  %330 = vmatprep.mubr.f32.mxu1 %v226_v26 }
  0x16   : > { %489 = vmatpush3.bf16.msra.mxu0 %v488_v27 }
  0x17   : > { %517 = vmatpush3.bf16.msra.mxu1 %v488_v27  ;;  %491 = vmatprep.subr.bf16.mxu0 %v490_v28 }
  0x18   : > { %510 = vmatprep.subr.bf16.mxu1 %v490_v28 }
  0x1a   : > { %493 = vmatpush3.bf16.msra.mxu0 %v492_v33 }
  0x1b   : > { %518 = vmatpush3.bf16.msra.mxu1 %v492_v33  ;;  %495 = vmatprep.subr.bf16.mxu0 %v494_v34 }
  0x1c   : > { %511 = vmatprep.subr.bf16.mxu1 %v494_v34 }
  0x1e   : > { %497 = vmatpush3.bf16.msra.mxu0 %v496_v39 }
  0x1f   : > { %519 = vmatpush3.bf16.msra.mxu1 %v496_v39  ;;  %499 = vmatprep.subr.bf16.mxu0 %v498_v40 }
  0x20   : > { %512 = vmatprep.subr.bf16.mxu1 %v498_v40 }
  0x22   : > { %501 = vmatpush3.bf16.msra.mxu0 %v500_v45 }
  0x23   : > { %520 = vmatpush3.bf16.msra.mxu1 %v500_v45  ;;  %503 = vmatprep.subr.bf16.mxu0 %v502_v46 }
  0x24   : > { %513 = vmatprep.subr.bf16.mxu1 %v502_v46 }
  0x26   : > { %505 = vmatpush3.bf16.msra.mxu0 %v504_v49 }
  0x27   : > { %521 = vmatpush3.bf16.msra.mxu1 %v504_v49 }
  0x29   : > { %326 = vmatmul.mubr.f32.vlgmr.msra.gmra.mrb[0].mxu0 %v223_v50 }
  0x2a   : > { %331 = vmatmul.mubr.f32.vlgmr.msra.gmra.mrb[0].mxu1 %v225_v51 }
  0xfc   : > { %v468_v52 = vpop.f32.mrb[0].mxu0 }
  0xfd   : > { %v471_v53 = vpop.f32.mrb[0].mxu1  ;;  %v469_v55 = vpop.f32.mrb[1].mxu0 }
  0xfe   : > { %v472_v57 = vpop.f32.mrb[1].mxu1  ;;  %v470_v58 = vadd.f32 %v469_v55, %v468_v52 }
  0xff   : > { %v473_v59 = vadd.f32 %v472_v57, %v471_v53 }
 0x100   : > { %v328_v60 = vadd.f32 %v470_v58, %v259_v54 }
 0x101   : > { %v333_v61 = vadd.f32 %v473_v59, %v260_v56 }
 0x102   : > { %337 = vst.msk [vmem:[%s220_s25] sm:$0xff] %vm336_vm0, %v328_v60 }
 0x103   : > { %338 = vst.msk [vmem:[%s220_s25 + $0x8] sm:$0xff] %vm336_vm0, %v333_v61 }
 0x104 PF: > { %s13_s14 = sadd.s32 1, %s568_s14   ;;  %s739_s12 = smov %s564_s13 }
 0x105   : > { %p10_p5 = scmp.ge.s32.totalorder %s13_s14, 4   ;;  %s740_s13 = smov %s742_s15 }
 0x107   :  { %12 = sbr.rel (!%p10_p5) target bundleno = 2 (0x2), region = 65 }

</bundles_post_ra>
